<compile_context>
chip_gen: v5e
topology: v5e:2x2
jax: 0.10.0
libtpu: 0.0.40
codegen_flags: <defaults>
</compile_context>

<pallas_src>
import functools

import jax
import jax.numpy as jnp
from jax import lax
from jax.experimental import pallas as pl
from jax.experimental.pallas import tpu as pltpu


# Default CLAP logit scale: exp(log(1/0.07)) == 1/0.07.
# TODO(synk): in a real CLAP checkpoint logit_scale is a learned parameter;
# pass the checkpoint value via `logit_scale=` to match the pretrained model.
_DEFAULT_LOGIT_SCALE = 1.0 / 0.07


# ---------------------------------------------------------------------------
# Kernel 1: row-wise L2 normalization  (== F.normalize(x, dim=-1))
# ---------------------------------------------------------------------------
def _l2_normalize_kernel(x_ref, o_ref):
    x = x_ref[...].astype(jnp.float32)
    sq = jnp.sum(x * x, axis=-1, keepdims=True)
    # x * rsqrt(max(||x||^2, 1e-24)) == x / max(||x||, 1e-12)  (F.normalize eps);
    # rsqrt runs on the otherwise-idle EUP slot instead of a VPU divide.
    inv_norm = lax.rsqrt(jnp.maximum(sq, 1e-24))
    o_ref[...] = (x * inv_norm).astype(o_ref.dtype)


def _round_down_to_multiple(v, m):
    return max(m, (v // m) * m)


def l2_normalize(x):
    """x: [B, D] -> L2-normalized along dim=-1, same shape/dtype."""
    B, D = x.shape
    # Per-row bytes in-flight: in + out tiles, double-buffered, f32 compute.
    # Target <= ~8 MiB per pipeline stage so even v7x (64 MiB VMEM, 32 MiB
    # scoped default) has plenty of headroom; cap at 1024 rows.
    bytes_per_row = D * 4 * 2 * 2
    rows_budget = max(8, (8 << 20) // max(bytes_per_row, 1))
    max_rows = _round_down_to_multiple(min(1024, rows_budget), 8)
    # Full-extent block for small batches ((8,128) exemption); otherwise a
    # sublane-aligned row tile so the BlockSpec pipeline double-buffers HBM.
    tb = B if B <= max_rows else max_rows
    grid = (pl.cdiv(B, tb),)
    return pl.pallas_call(
        _l2_normalize_kernel,
        out_shape=jax.ShapeDtypeStruct((B, D), x.dtype),
        grid=grid,
        in_specs=[pl.BlockSpec((tb, D), lambda i: (i, 0))],
        out_specs=pl.BlockSpec((tb, D), lambda i: (i, 0)),
        compiler_params=pltpu.CompilerParams(
            dimension_semantics=("parallel",)),
    )(x)


# ---------------------------------------------------------------------------
# Kernel 2: scaled similarity
#   compute_similarity returns (logit_scale * text @ audio.T).T
#                            == logit_scale * audio @ text.T   -> [n_audio, n_text]
# ---------------------------------------------------------------------------
def _similarity_kernel(audio_ref, text_ref, o_ref, *, scale):
    a = audio_ref[...]   # [TM, D] native dtype (bf16 keeps the fast MXU path)
    t = text_ref[...]    # [TN, D]
    # Contract over the embedding dim of both operands: a @ t.T without
    # materializing a transposed copy of the text tile.
    acc = lax.dot_general(
        a, t,
        dimension_numbers=(((1,), (1,)), ((), ())),
        preferred_element_type=jnp.float32,
    )                                                   # [TM, TN] f32
    o_ref[...] = (scale * acc).astype(o_ref.dtype)


def compute_similarity(audio_embeddings, text_embeddings, *,
                       logit_scale=_DEFAULT_LOGIT_SCALE,
                       tile_m=256, tile_n=256):
    """audio: [Na, D], text: [Nt, D] -> [Na, Nt] (== similarity.T in PyTorch)."""
    Na, D = audio_embeddings.shape
    Nt, Dt = text_embeddings.shape
    assert D == Dt, "embedding dims must match"

    # Full-extent blocks for small batches; otherwise 256-aligned panels
    # (native MXU shape on v6e/v7x) with the whole D as the contraction so no
    # K grid axis / accumulator carry is needed (D=512 for CLAP).
    tm = Na if Na <= tile_m else tile_m
    tn = Nt if Nt <= tile_n else tile_n
    grid = (pl.cdiv(Na, tm), pl.cdiv(Nt, tn))

    kernel = functools.partial(_similarity_kernel, scale=float(logit_scale))
    flops = 2 * Na * Nt * D
    bytes_accessed = (Na * D + Nt * D) * audio_embeddings.dtype.itemsize + Na * Nt * 4
    return pl.pallas_call(
        kernel,
        out_shape=jax.ShapeDtypeStruct((Na, Nt), jnp.float32),
        grid=grid,
        in_specs=[
            pl.BlockSpec((tm, D), lambda i, j: (i, 0)),   # audio row-panel
            pl.BlockSpec((tn, D), lambda i, j: (j, 0)),   # text row-panel
        ],
        out_specs=pl.BlockSpec((tm, tn), lambda i, j: (i, j)),
        compiler_params=pltpu.CompilerParams(
            dimension_semantics=("parallel", "parallel")),
        cost_estimate=pl.CostEstimate(
            flops=flops, transcendentals=0, bytes_accessed=bytes_accessed),
    )(audio_embeddings, text_embeddings)


# ---------------------------------------------------------------------------
# Wrapper mirroring the public surface of CLAPWrapper that is defined in the
# module itself (the external pretrained encoders are not reimplemented).
# ---------------------------------------------------------------------------
class CLAPWrapperPallas:
    def __init__(self, sampling_rate: int = 32000, duration: int = 220500,
                 logit_scale: float = _DEFAULT_LOGIT_SCALE):
        self.sampling_rate = sampling_rate
        self.duration = duration
        self.logit_scale = logit_scale
        # TODO(synk): HTSAT-tiny audio tower and RoBERTa text tower come from an
        # external pretrained checkpoint (`create_model`) and are not part of
        # this module's own code; they are not reimplemented here.

    def get_text_embeddings(self, text_features):
        # PyTorch: embed = model.get_text_embedding(tokens); F.normalize(embed, -1)
        # `text_features` stands in for the encoder output [B, D].
        return l2_normalize(text_features)

    def get_audio_embeddings(self, audio_features):
        # PyTorch: embed = model.get_audio_embedding(audio_dicts); F.normalize(embed, -1)
        # TODO(synk): torchaudio resampling / get_audio_features mel-fusion
        # preprocessing has no clean Pallas equivalent and is omitted.
        return l2_normalize(audio_features)

    def forward(self, batch_features, modality: str):
        # Encoders are external (see TODO above); forward here applies the
        # wrapper-level math on pre-encoded features.
        if modality in ("audio", "text"):
            return l2_normalize(batch_features)
        raise ValueError(f"unknown modality {modality}")

    def compute_similarity(self, audio_embeddings, text_embeddings):
        return compute_similarity(audio_embeddings, text_embeddings,
                                  logit_scale=self.logit_scale)


# ---------------------------------------------------------------------------
# Self-test
# ---------------------------------------------------------------------------
if __name__ == "__main__":
    def ref_norm(x):
        x = x.astype(jnp.float32)
        return x / jnp.maximum(jnp.linalg.norm(x, axis=-1, keepdims=True), 1e-12)

    def ref_sim(a, t, scale=_DEFAULT_LOGIT_SCALE):
        return (scale * t.astype(jnp.float32) @ a.astype(jnp.float32).T).T

    key = jax.random.PRNGKey(0)
    k_audio, k_text, k_big_a, k_big_t = jax.random.split(key, 4)

    clap = CLAPWrapperPallas()

    # --- small shapes (single-block path; CLAP embedding dim D=512) ---------
    n_audio, n_text, embed_dim = 8, 8, 512
    audio_feat = jax.random.normal(k_audio, (n_audio, embed_dim), dtype=jnp.float32)
    text_feat = jax.random.normal(k_text, (n_text, embed_dim), dtype=jnp.float32)

    audio_emb = clap.get_audio_embeddings(audio_feat)
    text_emb = clap.get_text_embeddings(text_feat)
    sim = clap.compute_similarity(audio_emb, text_emb)
    jax.block_until_ready((audio_emb, text_emb, sim))

    assert jnp.allclose(audio_emb, ref_norm(audio_feat), atol=1e-5)
    assert jnp.allclose(text_emb, ref_norm(text_feat), atol=1e-5)
    assert jnp.allclose(sim, ref_sim(ref_norm(audio_feat), ref_norm(text_feat)),
                        atol=1e-3)

    # --- moderate shapes: exercise the tiled grid / partial-tile path -------
    big_a = jax.random.normal(k_big_a, (384, embed_dim), dtype=jnp.float32)  # 256+128
    big_t = jax.random.normal(k_big_t, (320, embed_dim), dtype=jnp.float32)  # 256+64

    big_a_emb = clap.get_audio_embeddings(big_a)
    big_t_emb = clap.get_text_embeddings(big_t)
    big_sim = clap.compute_similarity(big_a_emb, big_t_emb)
    jax.block_until_ready((big_a_emb, big_t_emb, big_sim))

    assert jnp.allclose(big_a_emb, ref_norm(big_a), atol=1e-5)
    assert jnp.allclose(big_t_emb, ref_norm(big_t), atol=1e-5)
    assert jnp.allclose(big_sim, ref_sim(ref_norm(big_a), ref_norm(big_t)),
                        atol=1e-3)

    print("KERNEL_OK")
</pallas_src>

<mosaic_0001>
module attributes {stable_mosaic.version = 11 : i64} {
  func.func @_l2_normalize_kernel(%arg0: i32, %arg1: memref<8x512xf32, #tpu.memory_space<vmem>>, %arg2: memref<8x512xf32, #tpu.memory_space<vmem>>) attributes {dimension_semantics = [#tpu.dimension_semantics<parallel>], iteration_bounds = array<i64: 1>, scalar_prefetch = 0 : i64, scratch_operands = 0 : i64, tpu.core_type = #tpu.core_type<tc>, window_params = [{transform_indices = @transform_0, window_bounds = array<i64: 8, 512>}, {transform_indices = @transform_1, window_bounds = array<i64: 8, 512>}]} {
    %c0 = arith.constant 0 : index
    %c0_0 = arith.constant 0 : index
    %0 = vector.load %arg1[%c0, %c0_0] : memref<8x512xf32, #tpu.memory_space<vmem>>, vector<8x512xf32>
    %1 = arith.mulf %0, %0 : vector<8x512xf32>
    %cst = arith.constant dense<0.000000e+00> : vector<8xf32>
    %2 = vector.multi_reduction <add>, %1, %cst [1] : vector<8x512xf32> to vector<8xf32>
    %3 = vector.shape_cast %2 : vector<8xf32> to vector<8x1xf32>
    %cst_1 = arith.constant 1.000000e-24 : f32
    %4 = vector.broadcast %cst_1 : f32 to vector<8x1xf32>
    %5 = arith.maximumf %3, %4 : vector<8x1xf32>
    %6 = math.rsqrt %5 : vector<8x1xf32>
    %7 = vector.broadcast %6 : vector<8x1xf32> to vector<8x512xf32>
    %8 = arith.mulf %0, %7 : vector<8x512xf32>
    %c0_2 = arith.constant 0 : index
    %c0_3 = arith.constant 0 : index
    %9 = vector.load %arg2[%c0_2, %c0_3] : memref<8x512xf32, #tpu.memory_space<vmem>>, vector<8x512xf32>
    tpu.vector_store %arg2[%c0_2, %c0_3], %8 {strides = array<i32>} : memref<8x512xf32, #tpu.memory_space<vmem>>, vector<8x512xf32>,
    return
  }
  func.func @transform_0(%arg0: i32) -> (i32, i32) {
    %c0_i32 = arith.constant 0 : i32
    %c0_i32_0 = arith.constant 0 : i32
    return %arg0, %c0_i32 : i32, i32
  }
  func.func @transform_1(%arg0: i32) -> (i32, i32) {
    %c0_i32 = arith.constant 0 : i32
    %c0_i32_0 = arith.constant 0 : i32
    return %arg0, %c0_i32 : i32, i32
  }
}

</mosaic_0001>

<bundles_post_ra>
// kernel: tpu_custom_call.1
= control target key start
LH: loop header
LB: loop body
LE: loop exit
PB: predicated region body
PF: predicated region fallthrough
CT: control target
= control target key end

     0   :  { %6 = vsyncpa [#allocation3], 0  ;;  %s146_s0 = inlined_call_operand.hbm [shape: f32[8,512], index: 0, kind: input, shape index: {}]   ;;  %s147_s1 = inlined_call_operand.hbm [shape: f32[8,512], index: 1, kind: output, shape index: {}]  }
   0x1   :  { %7 = vsyncpa [#allocation4], 0  ;;  %s13_s8 = sshll.u32 %s146_s0, 4  ;;  %s128_s9 = smov [#allocation2]   ;;  %s14_s8 = int_to_ptr.hbm [resolvable:$true] %s13_s8 }
   0x2   :  { %s15_s10 = sshll.u32 %s128_s9, 4  ;;  %s16_s10 = int_to_ptr.vmem [resolvable:$true] %s15_s10 }
   0x3   :  { %18 = dma.hbm_to_vmem [thread:$0]  %s14_s8, 512, %s16_s10, [#allocation3]  }
   0x4   :  { %124 = dma.done.wait [#allocation3], 512  }
   0x5   :  { %125 = vsyncadd [#allocation3], 4294966784  ;;  %v23_v0 = vld [vmem:[#allocation2] sm:$0xff]  ;;  %v24_v1 = vld [vmem:[#allocation2 + $0x8] sm:$0xff]  ;;  %s129_s0 = smov [#allocation5]   ;;  %s62_s14 = sshll.u32 %s147_s1, 4  ;;  %s63_s14 = int_to_ptr.hbm [resolvable:$true] %s62_s14 }
   0x6   :  { %v25_v2 = vld [vmem:[#allocation2 + $0x10] sm:$0xff]  ;;  %v26_v3 = vld [vmem:[#allocation2 + $0x18] sm:$0xff]  ;;  %v27_v4 = vmul.f32 %v23_v0, %v23_v0  ;;  %v28_v5 = vmul.f32 %v24_v1, %v24_v1  ;;  %s60_s11 = sshll.u32 %s129_s0, 4  ;;  %s61_s11 = int_to_ptr.vmem [resolvable:$true] %s60_s11 }
   0x7   :  { %v29_v6 = vmul.f32 %v25_v2, %v25_v2  ;;  %v30_v7 = vmul.f32 %v26_v3, %v26_v3 }
   0x8   :  { %v31_v8 = vadd.f32 %v28_v5, %v27_v4 }
   0xa   :  { %v32_v9 = vadd.f32 %v31_v8, %v29_v6 }
   0xc   :  { %v33_v10 = vadd.f32 %v32_v9, %v30_v7 }
   0xe   :  { %34 = vadd.xlane.f32.xlu0 %v33_v10 }
  0x81   :  { %v35_v11 = vpop.xlane.xlu0 %34 }
  0x82   :  { %v36_v12 = vmax.f32 %v35_v11, 1e-24 }
  0x84   :  { %74 = vrsqrt.f32 %v36_v12  ;;  %vm43_vm1 = vweird.f32 %v36_v12 }
  0x8a   :  { %v75_v13 = vpop.eup %74 }
  0x8b   :  { %v38_v14 = vmul.f32 %v75_v13, %v36_v12  ;;  %vm44_vm0 = vweird.f32 %v75_v13 }
  0x8c   :  { %vm45_vm2 = vmor %vm43_vm1, %vm44_vm0 }
  0x8d   :  { %v39_v15 = vmul.f32 %v75_v13, %v38_v14 }
  0x8f   :  { %v40_v16 = vmul.f32 0.5, %v39_v15 }
  0x91   :  { %v41_v17 = vsub.f32 1.5, %v40_v16 }
  0x93   :  { %v42_v18 = vmul.f32 %v75_v13, %v41_v17 }
  0x95   :  { %v46_v19 = vsel %vm45_vm2, %v75_v13, %v42_v18 }
  0x96   :  { %v47_v20 = vmul.f32 %v46_v19, %v23_v0  ;;  %v48_v21 = vmul.f32 %v46_v19, %v24_v1  ;;  %v49_v22 = vmul.f32 %v46_v19, %v25_v2  ;;  %v50_v23 = vmul.f32 %v46_v19, %v26_v3 }
  0x98   :  { %51 = vst [vmem:[#allocation5] sm:$0xff] %v47_v20 }
  0x99   :  { %52 = vst [vmem:[#allocation5 + $0x8] sm:$0xff] %v48_v21 }
  0x9a   :  { %53 = vst [vmem:[#allocation5 + $0x10] sm:$0xff] %v49_v22 }
  0x9b   :  { %54 = vst [vmem:[#allocation5 + $0x18] sm:$0xff] %v50_v23 }
  0x9c   :  { %65 = dma.vmem_to_hbm [thread:$0]  %s61_s11, 512, %s63_s14, [#allocation4]  }
  0x9d   :  { %126 = dma.done.wait [#allocation4], 512  }
  0x9e   :  { %127 = vsyncadd [#allocation4], 4294966784 }
  0x9f   :  { %70 = vsyncpa [#allocation3], 1 }
  0xa0   :  { %71 = vsyncpa [#allocation4], 1 }

</bundles_post_ra>
